<compile_context>
chip_gen: v7x
topology: tpu7x:2x2x1
jax: 0.10.0
libtpu: 0.0.40
codegen_flags: <defaults>
</compile_context>

<pallas_src>
import math
import functools

import jax
import jax.numpy as jnp
from jax.experimental import pallas as pl
from jax.experimental.pallas import tpu as pltpu


def _cdiv(a, b):
    return (a + b - 1) // b


def _ohem_ce_kernel(logits_ref, labels_ref, loss_ref, cnt_ref, sum_ref, *,
                    thresh_val, ignore_lb, rows_total, rows_per_block, ragged):
    """One (1, C, TS, 128) logits block -> per-pixel CE + OHEM partial stats.

    logits_ref: (1, C, TS, 128) input dtype     labels_ref: (1, TS, 128) int32
    loss_ref:   (1, TS, 128)    f32             cnt_ref:    (1, 1, 1, 128) i32
                                                sum_ref:    (1, 1, 1, 128) f32
    """
    C = logits_ref.shape[1]
    lbl = labels_ref[0]                                    # (TS, 128) int32

    # ---- class max (input dtype; bf16 stays bf16 on v6e/v7x VPUs) ----
    m = logits_ref[0, 0]
    for c in range(1, C):
        m = jnp.maximum(m, logits_ref[0, c])

    # ---- exp-sum + one-hot pick, reusing shifted = x_c - m for both ----
    sumexp = jnp.zeros(m.shape, jnp.float32)
    picked = jnp.zeros(m.shape, jnp.float32)
    for c in range(C):
        shifted = (logits_ref[0, c] - m).astype(jnp.float32)
        sumexp = sumexp + jnp.exp(shifted)
        picked = picked + jnp.where(lbl == c, shifted, 0.0)

    # CE = log(sum exp(x - m)) - (x[label] - m)
    loss = jnp.log(sumexp) - picked                        # (TS, 128) f32

    # ---- mask ignored pixels (and the ragged row tail of the last block) ----
    valid = lbl != ignore_lb
    if ragged:
        row = jax.lax.broadcasted_iota(jnp.int32, m.shape, 0)
        rows_left = rows_total - pl.program_id(1) * rows_per_block
        valid = jnp.logical_and(valid, row < rows_left)
    loss = jnp.where(valid, loss, 0.0)                     # ignored -> 0 (as PyTorch)
    loss_ref[0] = loss

    # ---- fused OHEM statistics (per-lane partials; finished in JAX) ----
    hard = loss > thresh_val
    cnt_ref[0, 0] = jnp.sum(hard.astype(jnp.int32), axis=0, keepdims=True)
    sum_ref[0, 0] = jnp.sum(jnp.where(hard, loss, 0.0), axis=0, keepdims=True)


def _pick_row_tile(n, rows, c, itemsize, *, max_rows=64,
                   vmem_budget=16 * 1024 * 1024, min_grid_steps=16):
    """Rows (of 128 pixels) per block: multiple of 8 (or full extent),
    VMEM-budget aware, small enough to give megacore (v7x) enough grid steps."""
    if rows <= 8:
        return rows                      # full extent is always a legal block dim
    # ~2x double-buffered logits block + labels/loss blocks + a few f32 temps
    bytes_per_row = (2 * c * itemsize + 48) * 128
    ts = min(max_rows, max(8, vmem_budget // bytes_per_row), rows)
    ts -= ts % 8
    ts = max(ts, 8)
    while n * _cdiv(rows, ts) < min_grid_steps and ts > 8:
        ts -= 8
    return ts


def per_pixel_ce_with_stats(logits_nchw, labels_nhw, *, thresh_val, ignore_lb=255):
    """Per-pixel softmax CE (reduction='none', ignore_index -> 0) plus fused
    per-block OHEM statistics.  Returns (loss_flat, cnt_partials, sum_partials)."""
    N, C, H, W = logits_nchw.shape
    HW = H * W
    R = _cdiv(HW, 128)

    labels_flat = labels_nhw.reshape(N, HW)
    if labels_flat.dtype != jnp.int32:
        labels_flat = labels_flat.astype(jnp.int32)

    if HW % 128 == 0:
        # copy-free relayout: pixels on (sublane, lane) = (R, 128)
        logits_v = logits_nchw.reshape(N, C, R, 128)
        labels_v = labels_flat.reshape(N, R, 128)
    else:
        # TODO(synk): rare ragged case (H*W % 128 != 0) still pays one jnp.pad
        # copy of the logits; a lane-masked tail kernel would remove it.
        pad = R * 128 - HW
        logits_v = jnp.pad(logits_nchw.reshape(N, C, HW),
                           ((0, 0), (0, 0), (0, pad))).reshape(N, C, R, 128)
        labels_v = jnp.pad(labels_flat, ((0, 0), (0, pad)),
                           constant_values=ignore_lb).reshape(N, R, 128)

    ts = _pick_row_tile(N, R, C, jnp.dtype(logits_v.dtype).itemsize)
    pb = _cdiv(R, ts)
    ragged = (R % ts) != 0

    kernel = functools.partial(
        _ohem_ce_kernel, thresh_val=thresh_val, ignore_lb=ignore_lb,
        rows_total=R, rows_per_block=ts, ragged=ragged)

    loss, cnt_part, sum_part = pl.pallas_call(
        kernel,
        out_shape=(
            jax.ShapeDtypeStruct((N, R, 128), jnp.float32),
            jax.ShapeDtypeStruct((N, pb, 1, 128), jnp.int32),
            jax.ShapeDtypeStruct((N, pb, 1, 128), jnp.float32),
        ),
        grid_spec=pltpu.PrefetchScalarGridSpec(
            num_scalar_prefetch=0,
            grid=(N, pb),
            in_specs=[
                pl.BlockSpec((1, C, ts, 128), lambda n, p: (n, 0, p, 0)),
                pl.BlockSpec((1, ts, 128), lambda n, p: (n, p, 0)),
            ],
            out_specs=[
                pl.BlockSpec((1, ts, 128), lambda n, p: (n, p, 0)),
                pl.BlockSpec((1, 1, 1, 128), lambda n, p: (n, p, 0, 0)),
                pl.BlockSpec((1, 1, 1, 128), lambda n, p: (n, p, 0, 0)),
            ],
        ),
        compiler_params=pltpu.CompilerParams(
            dimension_semantics=("parallel", "parallel"),
            vmem_limit_bytes=32 * 1024 * 1024,
        ),
    )(logits_v, labels_v)

    return loss.reshape(-1), cnt_part, sum_part


def ohem_ce_loss(logits_nchw, labels_nhw, *, thresh=0.7, n_min=64, ignore_lb=255):
    """Matches OhemCELoss.forward: logits (N, C, H, W) float, labels (N, H, W) int."""
    thresh_val = float(-math.log(thresh))

    loss, cnt_part, sum_part = per_pixel_ce_with_stats(
        logits_nchw, labels_nhw, thresh_val=thresh_val, ignore_lb=ignore_lb)

    cnt = jnp.sum(cnt_part)          # exact integer count of loss > thresh
    sum_hard = jnp.sum(sum_part)     # sum of losses strictly above thresh

    def _mean_hard(loss_flat):
        # count > n_min >= 1 is guaranteed on this branch -> no div-by-zero.
        return sum_hard / cnt.astype(jnp.float32)

    def _mean_topk(loss_flat):
        vals, _ = jax.lax.top_k(loss_flat, n_min)
        return jnp.mean(vals)

    # `cnt > n_min` is exactly `sorted_descending[n_min] > thresh` (both strict);
    # top_k only executes when the threshold branch fails.
    return jax.lax.cond(cnt > n_min, _mean_hard, _mean_topk, loss)


def _ohem_reference(logits, labels, thresh, n_min, ignore_lb):
    """Pure-JAX reference with the original PyTorch semantics."""
    N, C, H, W = logits.shape
    x = logits.astype(jnp.float32).transpose(0, 2, 3, 1).reshape(-1, C)
    lbl = labels.reshape(-1)
    lse = jax.nn.logsumexp(x, axis=-1)
    picked = jnp.take_along_axis(
        x, jnp.clip(lbl, 0, C - 1).astype(jnp.int32)[:, None], axis=-1)[:, 0]
    loss = jnp.where(lbl == ignore_lb, 0.0, lse - picked)
    srt = jnp.sort(loss)[::-1]
    t = -math.log(thresh)
    hard = loss > t
    mean_hard = jnp.sum(jnp.where(hard, loss, 0.0)) / jnp.maximum(
        jnp.sum(hard.astype(jnp.float32)), 1.0)
    mean_top = jnp.mean(srt[:n_min])
    return jnp.where(srt[n_min] > t, mean_hard, mean_top)


if __name__ == "__main__":
    key = jax.random.PRNGKey(0)
    k_logit, k_label, k_ign = jax.random.split(key, 3)

    N, C, H, W = 2, 4, 16, 16                 # P = 512 pixels
    n_min = (N * H * W) // 16                 # 32

    logits = jax.random.normal(k_logit, (N, C, H, W), dtype=jnp.float32)
    labels = jax.random.randint(k_label, (N, H, W), 0, C, dtype=jnp.int32)
    ign_mask = jax.random.uniform(k_ign, (N, H, W)) < 0.1
    labels = jnp.where(ign_mask, jnp.int32(255), labels)

    fn = jax.jit(functools.partial(ohem_ce_loss, thresh=0.7, n_min=n_min,
                                   ignore_lb=255))
    out = fn(logits, labels)
    jax.block_until_ready(out)

    ref = _ohem_reference(logits, labels, 0.7, n_min, 255)
    assert jnp.allclose(out, ref, rtol=1e-3, atol=1e-5), (out, ref)
    print("KERNEL_OK")
</pallas_src>

<mosaic_0001>
module attributes {stable_mosaic.version = 11 : i64} {
  func.func @_ohem_ce_kernel(%arg0: i32, %arg1: i32, %arg2: memref<1x4x2x128xf32, #tpu.memory_space<vmem>>, %arg3: memref<1x2x128xi32, #tpu.memory_space<vmem>>, %arg4: memref<1x2x128xf32, #tpu.memory_space<vmem>>, %arg5: memref<1x1x1x128xi32, #tpu.memory_space<vmem>>, %arg6: memref<1x1x1x128xf32, #tpu.memory_space<vmem>>) attributes {dimension_semantics = [#tpu.dimension_semantics<parallel>, #tpu.dimension_semantics<parallel>], iteration_bounds = array<i64: 2, 1>, scalar_prefetch = 0 : i64, scratch_operands = 0 : i64, tpu.core_type = #tpu.core_type<tc>, window_params = [{transform_indices = @transform_0, window_bounds = array<i64: 1, 4, 2, 128>}, {transform_indices = @transform_1, window_bounds = array<i64: 1, 2, 128>}, {transform_indices = @transform_2, window_bounds = array<i64: 1, 2, 128>}, {transform_indices = @transform_3, window_bounds = array<i64: 1, 1, 1, 128>}, {transform_indices = @transform_4, window_bounds = array<i64: 1, 1, 1, 128>}]} {
    %c0 = arith.constant 0 : index
    %c0_0 = arith.constant 0 : index
    %c0_1 = arith.constant 0 : index
    %0 = vector.load %arg3[%c0, %c0_0, %c0_1] : memref<1x2x128xi32, #tpu.memory_space<vmem>>, vector<1x2x128xi32>
    %1 = vector.shape_cast %0 : vector<1x2x128xi32> to vector<2x128xi32>
    %c0_2 = arith.constant 0 : index
    %c0_3 = arith.constant 0 : index
    %c0_4 = arith.constant 0 : index
    %c0_5 = arith.constant 0 : index
    %2 = vector.load %arg2[%c0_2, %c0_3, %c0_4, %c0_5] : memref<1x4x2x128xf32, #tpu.memory_space<vmem>>, vector<1x1x2x128xf32>
    %3 = vector.shape_cast %2 : vector<1x1x2x128xf32> to vector<2x128xf32>
    %c0_6 = arith.constant 0 : index
    %c1 = arith.constant 1 : index
    %c0_7 = arith.constant 0 : index
    %c0_8 = arith.constant 0 : index
    %4 = vector.load %arg2[%c0_6, %c1, %c0_7, %c0_8] : memref<1x4x2x128xf32, #tpu.memory_space<vmem>>, vector<1x1x2x128xf32>
    %5 = vector.shape_cast %4 : vector<1x1x2x128xf32> to vector<2x128xf32>
    %6 = arith.maximumf %3, %5 : vector<2x128xf32>
    %c0_9 = arith.constant 0 : index
    %c2 = arith.constant 2 : index
    %c0_10 = arith.constant 0 : index
    %c0_11 = arith.constant 0 : index
    %7 = vector.load %arg2[%c0_9, %c2, %c0_10, %c0_11] : memref<1x4x2x128xf32, #tpu.memory_space<vmem>>, vector<1x1x2x128xf32>
    %8 = vector.shape_cast %7 : vector<1x1x2x128xf32> to vector<2x128xf32>
    %9 = arith.maximumf %6, %8 : vector<2x128xf32>
    %c0_12 = arith.constant 0 : index
    %c3 = arith.constant 3 : index
    %c0_13 = arith.constant 0 : index
    %c0_14 = arith.constant 0 : index
    %10 = vector.load %arg2[%c0_12, %c3, %c0_13, %c0_14] : memref<1x4x2x128xf32, #tpu.memory_space<vmem>>, vector<1x1x2x128xf32>
    %11 = vector.shape_cast %10 : vector<1x1x2x128xf32> to vector<2x128xf32>
    %12 = arith.maximumf %9, %11 : vector<2x128xf32>
    %cst = arith.constant 0.000000e+00 : f32
    %13 = vector.broadcast %cst : f32 to vector<2x128xf32>
    %cst_15 = arith.constant 0.000000e+00 : f32
    %14 = vector.broadcast %cst_15 : f32 to vector<2x128xf32>
    %c0_16 = arith.constant 0 : index
    %c0_17 = arith.constant 0 : index
    %c0_18 = arith.constant 0 : index
    %c0_19 = arith.constant 0 : index
    %15 = vector.load %arg2[%c0_16, %c0_17, %c0_18, %c0_19] : memref<1x4x2x128xf32, #tpu.memory_space<vmem>>, vector<1x1x2x128xf32>
    %16 = vector.shape_cast %15 : vector<1x1x2x128xf32> to vector<2x128xf32>
    %17 = arith.subf %16, %12 : vector<2x128xf32>
    %18 = math.exp %17 : vector<2x128xf32>
    %19 = arith.addf %13, %18 : vector<2x128xf32>
    %c0_i32 = arith.constant 0 : i32
    %20 = vector.broadcast %c0_i32 : i32 to vector<2x128xi32>
    %21 = arith.cmpi eq, %1, %20 : vector<2x128xi32>
    %cst_20 = arith.constant 0.000000e+00 : f32
    %22 = vector.broadcast %cst_20 : f32 to vector<2x128xf32>
    %23 = arith.select %21, %17, %22 : vector<2x128xi1>, vector<2x128xf32>
    %24 = arith.addf %14, %23 : vector<2x128xf32>
    %c0_21 = arith.constant 0 : index
    %c1_22 = arith.constant 1 : index
    %c0_23 = arith.constant 0 : index
    %c0_24 = arith.constant 0 : index
    %25 = vector.load %arg2[%c0_21, %c1_22, %c0_23, %c0_24] : memref<1x4x2x128xf32, #tpu.memory_space<vmem>>, vector<1x1x2x128xf32>
    %26 = vector.shape_cast %25 : vector<1x1x2x128xf32> to vector<2x128xf32>
    %27 = arith.subf %26, %12 : vector<2x128xf32>
    %28 = math.exp %27 : vector<2x128xf32>
    %29 = arith.addf %19, %28 : vector<2x128xf32>
    %c1_i32 = arith.constant 1 : i32
    %30 = vector.broadcast %c1_i32 : i32 to vector<2x128xi32>
    %31 = arith.cmpi eq, %1, %30 : vector<2x128xi32>
    %cst_25 = arith.constant 0.000000e+00 : f32
    %32 = vector.broadcast %cst_25 : f32 to vector<2x128xf32>
    %33 = arith.select %31, %27, %32 : vector<2x128xi1>, vector<2x128xf32>
    %34 = arith.addf %24, %33 : vector<2x128xf32>
    %c0_26 = arith.constant 0 : index
    %c2_27 = arith.constant 2 : index
    %c0_28 = arith.constant 0 : index
    %c0_29 = arith.constant 0 : index
    %35 = vector.load %arg2[%c0_26, %c2_27, %c0_28, %c0_29] : memref<1x4x2x128xf32, #tpu.memory_space<vmem>>, vector<1x1x2x128xf32>
    %36 = vector.shape_cast %35 : vector<1x1x2x128xf32> to vector<2x128xf32>
    %37 = arith.subf %36, %12 : vector<2x128xf32>
    %38 = math.exp %37 : vector<2x128xf32>
    %39 = arith.addf %29, %38 : vector<2x128xf32>
    %c2_i32 = arith.constant 2 : i32
    %40 = vector.broadcast %c2_i32 : i32 to vector<2x128xi32>
    %41 = arith.cmpi eq, %1, %40 : vector<2x128xi32>
    %cst_30 = arith.constant 0.000000e+00 : f32
    %42 = vector.broadcast %cst_30 : f32 to vector<2x128xf32>
    %43 = arith.select %41, %37, %42 : vector<2x128xi1>, vector<2x128xf32>
    %44 = arith.addf %34, %43 : vector<2x128xf32>
    %c0_31 = arith.constant 0 : index
    %c3_32 = arith.constant 3 : index
    %c0_33 = arith.constant 0 : index
    %c0_34 = arith.constant 0 : index
    %45 = vector.load %arg2[%c0_31, %c3_32, %c0_33, %c0_34] : memref<1x4x2x128xf32, #tpu.memory_space<vmem>>, vector<1x1x2x128xf32>
    %46 = vector.shape_cast %45 : vector<1x1x2x128xf32> to vector<2x128xf32>
    %47 = arith.subf %46, %12 : vector<2x128xf32>
    %48 = math.exp %47 : vector<2x128xf32>
    %49 = arith.addf %39, %48 : vector<2x128xf32>
    %c3_i32 = arith.constant 3 : i32
    %50 = vector.broadcast %c3_i32 : i32 to vector<2x128xi32>
    %51 = arith.cmpi eq, %1, %50 : vector<2x128xi32>
    %cst_35 = arith.constant 0.000000e+00 : f32
    %52 = vector.broadcast %cst_35 : f32 to vector<2x128xf32>
    %53 = arith.select %51, %47, %52 : vector<2x128xi1>, vector<2x128xf32>
    %54 = arith.addf %44, %53 : vector<2x128xf32>
    %55 = math.log %49 : vector<2x128xf32>
    %56 = arith.subf %55, %54 : vector<2x128xf32>
    %c255_i32 = arith.constant 255 : i32
    %57 = vector.broadcast %c255_i32 : i32 to vector<2x128xi32>
    %58 = arith.cmpi ne, %1, %57 : vector<2x128xi32>
    %cst_36 = arith.constant 0.000000e+00 : f32
    %59 = vector.broadcast %cst_36 : f32 to vector<2x128xf32>
    %60 = arith.select %58, %56, %59 : vector<2x128xi1>, vector<2x128xf32>
    %c0_37 = arith.constant 0 : index
    %c0_38 = arith.constant 0 : index
    %c0_39 = arith.constant 0 : index
    %61 = vector.load %arg4[%c0_37, %c0_38, %c0_39] : memref<1x2x128xf32, #tpu.memory_space<vmem>>, vector<1x2x128xf32>
    %62 = vector.shape_cast %61 : vector<1x2x128xf32> to vector<2x128xf32>
    %63 = vector.shape_cast %60 : vector<2x128xf32> to vector<1x2x128xf32>
    tpu.vector_store %arg4[%c0_37, %c0_38, %c0_39], %63 {strides = array<i32>} : memref<1x2x128xf32, #tpu.memory_space<vmem>>, vector<1x2x128xf32>,
    %cst_40 = arith.constant 0.356674939 : f32
    %64 = vector.broadcast %cst_40 : f32 to vector<2x128xf32>
    %65 = arith.cmpf ogt, %60, %64 : vector<2x128xf32>
    %66 = arith.extui %65 : vector<2x128xi1> to vector<2x128xi32>
    %cst_41 = arith.constant dense<0> : vector<128xi32>
    %67 = vector.multi_reduction <add>, %66, %cst_41 [0] : vector<2x128xi32> to vector<128xi32>
    %68 = vector.shape_cast %67 : vector<128xi32> to vector<1x128xi32>
    %c0_42 = arith.constant 0 : index
    %c0_43 = arith.constant 0 : index
    %c0_44 = arith.constant 0 : index
    %c0_45 = arith.constant 0 : index
    %69 = vector.load %arg5[%c0_42, %c0_43, %c0_44, %c0_45] : memref<1x1x1x128xi32, #tpu.memory_space<vmem>>, vector<1x1x1x128xi32>
    %70 = vector.shape_cast %69 : vector<1x1x1x128xi32> to vector<1x128xi32>
    %71 = vector.shape_cast %68 : vector<1x128xi32> to vector<1x1x1x128xi32>
    tpu.vector_store %arg5[%c0_42, %c0_43, %c0_44, %c0_45], %71 {strides = array<i32>} : memref<1x1x1x128xi32, #tpu.memory_space<vmem>>, vector<1x1x1x128xi32>,
    %cst_46 = arith.constant 0.000000e+00 : f32
    %72 = vector.broadcast %cst_46 : f32 to vector<2x128xf32>
    %73 = arith.select %65, %60, %72 : vector<2x128xi1>, vector<2x128xf32>
    %cst_47 = arith.constant dense<0.000000e+00> : vector<128xf32>
    %74 = vector.multi_reduction <add>, %73, %cst_47 [0] : vector<2x128xf32> to vector<128xf32>
    %75 = vector.shape_cast %74 : vector<128xf32> to vector<1x128xf32>
    %c0_48 = arith.constant 0 : index
    %c0_49 = arith.constant 0 : index
    %c0_50 = arith.constant 0 : index
    %c0_51 = arith.constant 0 : index
    %76 = vector.load %arg6[%c0_48, %c0_49, %c0_50, %c0_51] : memref<1x1x1x128xf32, #tpu.memory_space<vmem>>, vector<1x1x1x128xf32>
    %77 = vector.shape_cast %76 : vector<1x1x1x128xf32> to vector<1x128xf32>
    %78 = vector.shape_cast %75 : vector<1x128xf32> to vector<1x1x1x128xf32>
    tpu.vector_store %arg6[%c0_48, %c0_49, %c0_50, %c0_51], %78 {strides = array<i32>} : memref<1x1x1x128xf32, #tpu.memory_space<vmem>>, vector<1x1x1x128xf32>,
    return
  }
  func.func @transform_0(%arg0: i32, %arg1: i32) -> (i32, i32, i32, i32) {
    %c0_i32 = arith.constant 0 : i32
    %c0_i32_0 = arith.constant 0 : i32
    %c0_i32_1 = arith.constant 0 : i32
    return %arg0, %c0_i32, %arg1, %c0_i32_0 : i32, i32, i32, i32
  }
  func.func @transform_1(%arg0: i32, %arg1: i32) -> (i32, i32, i32) {
    %c0_i32 = arith.constant 0 : i32
    %c0_i32_0 = arith.constant 0 : i32
    return %arg0, %arg1, %c0_i32 : i32, i32, i32
  }
  func.func @transform_2(%arg0: i32, %arg1: i32) -> (i32, i32, i32) {
    %c0_i32 = arith.constant 0 : i32
    %c0_i32_0 = arith.constant 0 : i32
    return %arg0, %arg1, %c0_i32 : i32, i32, i32
  }
  func.func @transform_3(%arg0: i32, %arg1: i32) -> (i32, i32, i32, i32) {
    %c0_i32 = arith.constant 0 : i32
    %c0_i32_0 = arith.constant 0 : i32
    %c0_i32_1 = arith.constant 0 : i32
    return %arg0, %arg1, %c0_i32, %c0_i32_0 : i32, i32, i32, i32
  }
  func.func @transform_4(%arg0: i32, %arg1: i32) -> (i32, i32, i32, i32) {
    %c0_i32 = arith.constant 0 : i32
    %c0_i32_0 = arith.constant 0 : i32
    %c0_i32_1 = arith.constant 0 : i32
    return %arg0, %arg1, %c0_i32, %c0_i32_0 : i32, i32, i32, i32
  }
}

</mosaic_0001>

<bundles_post_ra>
// kernel: ohem_ce_loss.1
= control target key start
LH: loop header
LB: loop body
LE: loop exit
PB: predicated region body
PF: predicated region fallthrough
CT: control target
= control target key end

     0   :  { %s615_s15 = smov 0   ;;  %s617_s16 = smov 0   ;;  %s663_s0 = inlined_call_operand.vmem [shape: f32[2,4,2,128], index: 0, kind: input, shape index: {}]   ;;  %s664_s1 = inlined_call_operand.vmem [shape: s32[2,2,128], index: 1, kind: input, shape index: {}]   ;;  %s665_s2 = inlined_call_operand.vmem [shape: f32[2,2,128], index: 2, kind: output, shape index: {0}]   ;;  %s666_s3 = inlined_call_operand.vmem [shape: s32[2,1,1,128], index: 3, kind: output, shape index: {1}]   ;;  %s667_s4 = inlined_call_operand.vmem [shape: f32[2,1,1,128], index: 4, kind: output, shape index: {2}]  }
   0x1   :  { %s619_s17 = smov 0  }
   0x2 LB: > { %s27_s18 = sadd.s32 1, %s583_s16  ;;  %p519_p0 = scmp.ge.s32.totalorder %s587_s17, 1  ;;  %s587_s17 = sphi %s619_s17, %s15_s17   ;;  %s583_s16 = sphi %s617_s16, %s669_s16   ;;  %s579_s15 = sphi %s615_s15, %s668_s15  }
   0x3   : > { %p29_p1 = scmp.ge.s32.totalorder %s27_s18, 2  ;;  %p204_p2 = scmp.lt.s32.totalorder %s587_s17, 3 }
   0x5   : > { %s671_s18 = smov (%p29_p1, %s27_s18), 0  ;;  %p205_p3 = pnand %p519_p0, %p204_p2 }
   0x6   : > { %p254_p4 = scmp.lt.s32.totalorder (!%p205_p3), %s579_s15, 1  ;;  %vm335_vm5 = vcmask (!%p205_p3), 1041408   ;;  %v589_v34 = vmov (!%p205_p3), 0  }
   0x7   : > { %208 = sbr.rel (%p205_p3) target bundleno = 78 (0x4e), region = 28 }
   0xe   : > { %s673_s15 = smov (!%p254_p4, %s579_s15), 1 }
   0xf   : > { %s529_s19 = sshll.u32 %s673_s15, 3  ;;  %s522_s23 = sshll.u32 %s673_s15, 1 }
  0x10   : > { %s261_s22 = scalar_lea.vmem %s663_s0, %s529_s19  ;;  %s268_s26 = scalar_lea.vmem %s664_s1, %s522_s23 }
  0x11   : > { %v289_v0 = vld [vmem:[%s261_s22] sm:$0x3]  ;;  %v524_v1 = vld [vmem:[%s261_s22 + $0x2] sm:$0x3]  ;;  %v525_v3 = vld [vmem:[%s261_s22 + $0x4] sm:$0x3]  ;;  %s275_s29 = scalar_lea.vmem %s665_s2, %s522_s23  ;;  %s281_s6 = scalar_lea.vmem %s666_s3, %s673_s15 }
  0x12   : > { %v292_v2 = vmax.f32 %v289_v0, %v524_v1  ;;  %v526_v4 = vld [vmem:[%s261_s22 + $0x6] sm:$0x3]  ;;  %v288_v16 = vld [vmem:[%s268_s26] sm:$0x3]  ;;  %s287_s9 = scalar_lea.vmem %s667_s4, %s673_s15 }
  0x13   : > { %vm303_vm0 = vcmp.eq.s32.totalorder %v288_v16, 0  ;;  %vm310_vm1 = vcmp.eq.s32.totalorder %v288_v16, 1  ;;  %vm317_vm2 = vcmp.eq.s32.totalorder %v288_v16, 2  ;;  %vm324_vm3 = vcmp.eq.s32.totalorder %v288_v16, 3 }
  0x14   : > { %v295_v5 = vmax.f32 %v292_v2, %v525_v3  ;;  %vm330_vm4 = vcmp.ne.s32.totalorder %v288_v16, 255 }
  0x16   : > { %v298_v6 = vmax.f32 %v295_v5, %v526_v4 }
  0x18   : > { %v299_v7 = vsub.f32 %v289_v0, %v298_v6  ;;  %v306_v8 = vsub.f32 %v524_v1, %v298_v6  ;;  %v313_v9 = vsub.f32 %v525_v3, %v298_v6  ;;  %v320_v10 = vsub.f32 %v526_v4, %v298_v6 }
  0x1a   : > { %v300_v11 = vmul.f32 1.442695, %v299_v7  ;;  %v307_v12 = vmul.f32 1.442695, %v306_v8  ;;  %v314_v13 = vmul.f32 1.442695, %v313_v9 }
  0x1b   : > { %v321_v14 = vmul.f32 1.442695, %v320_v10  ;;  %v304_v22 = vsel %vm303_vm0, %v299_v7, 0.0  ;;  %v311_v23 = vsel %vm310_vm1, %v306_v8, 0.0  ;;  %v318_v26 = vsel %vm317_vm2, %v313_v9, 0.0 }
  0x1c   : > { %555 = vpow2.f32 %v300_v11  ;;  %v312_v25 = vadd.f32 %v311_v23, %v304_v22  ;;  %v325_v28 = vsel %vm324_vm3, %v320_v10, 0.0 }
  0x1d   : > { %557 = vpow2.f32 %v307_v12 }
  0x1e   : > { %559 = vpow2.f32 %v314_v13  ;;  %v319_v27 = vadd.f32 %v318_v26, %v312_v25 }
  0x1f   : > { %561 = vpow2.f32 %v321_v14 }
  0x20   : > { %v326_v29 = vadd.f32 %v325_v28, %v319_v27 }
  0x26   : > { %v556_v15 = vpop.eup %555 }
  0x27   : > { %v558_v17 = vpop.eup %557 }
  0x28   : > { %v560_v18 = vpop.eup %559  ;;  %v309_v19 = vadd.f32 %v558_v17, %v556_v15 }
  0x29   : > { %v562_v20 = vpop.eup %561 }
  0x2a   : > { %v316_v21 = vadd.f32 %v560_v18, %v309_v19 }
  0x2c   : > { %v323_v24 = vadd.f32 %v562_v20, %v316_v21 }
  0x2e   : > { %563 = vlog2.f32 %v323_v24 }
  0x38   : > { %v564_v30 = vpop.eup %563 }
  0x39   : > { %v328_v31 = vmul.f32 0.6931472, %v564_v30 }
  0x3b   : > { %v329_v32 = vsub.f32 %v328_v31, %v326_v29 }
  0x3d   : > { %v331_v33 = vsel %vm330_vm4, %v329_v32, 0.0 }
  0x3e   : > { %332 = vst [vmem:[%s275_s29] sm:$0x3] %v331_v33  ;;  %vm333_vm6 = vcmp.gt.f32.partialorder %v331_v33, 0.35667494 }
  0x3f   : > { %v334_v35 = vsel %vm333_vm6, 1, %v589_v34  ;;  %v344_v36 = vsel %vm333_vm6, %v331_v33, 0.0 }
  0x40   : > { %v336_v37 = vsel %vm335_vm5, %v334_v35, 0  ;;  %v345_v38 = vsel %vm335_vm5, %v344_v36, 0.0 }
  0x41   : > { %v337_v39 = vrot.slane %v336_v37, 4  ;;  %v346_v40 = vrot.slane %v345_v38, 4 }
  0x43   : > { %v338_v41 = vadd.s32 %v337_v39, %v336_v37  ;;  %v347_v42 = vadd.f32 %v346_v40, %v345_v38 }
  0x45   : > { %v339_v43 = vrot.slane %v338_v41, 2  ;;  %v348_v44 = vrot.slane %v347_v42, 2 }
  0x47   : > { %v340_v45 = vadd.s32 %v339_v43, %v338_v41  ;;  %v349_v46 = vadd.f32 %v348_v44, %v347_v42 }
  0x49   : > { %v341_v47 = vrot.slane %v340_v45, 1  ;;  %v350_v48 = vrot.slane %v349_v46, 1 }
  0x4b   : > { %v342_v49 = vadd.s32 %v341_v47, %v340_v45  ;;  %v351_v50 = vadd.f32 %v350_v48, %v349_v46 }
  0x4d   : > { %343 = vst [vmem:[%s281_s6] sm:$0x1] %v342_v49  ;;  %352 = vst [vmem:[%s287_s9] sm:$0x1] %v351_v50 }
  0x4e PF: > { %s15_s17 = sadd.s32 1, %s587_s17   ;;  %s668_s15 = smov %s583_s16 }
  0x4f   : > { %p12_p5 = scmp.ge.s32.totalorder %s15_s17, 4   ;;  %s669_s16 = smov %s671_s18 }
  0x51   :  { %14 = sbr.rel (!%p12_p5) target bundleno = 2 (0x2), region = 88 }

</bundles_post_ra>
